<compile_context>
chip_gen: v6e
topology: v6e:2x2x1
jax: 0.10.0
libtpu: 0.0.40
codegen_flags: <defaults>
</compile_context>

<pallas_src>
import functools

import jax
import jax.numpy as jnp
import numpy as np
from jax.experimental import pallas as pl
from jax.experimental.pallas import tpu as pltpu


# ----------------------------------------------------------------------------
# TPU-generation helpers
# ----------------------------------------------------------------------------
def _tpu_generation():
    """Best-effort chip-generation tag ('v5' | 'v6' | 'v7' | None)."""
    try:
        kind = jax.devices()[0].device_kind.lower()
    except Exception:                           # non-TPU / exotic backends
        return None
    for g in ("v7", "v6", "v5"):
        if g in kind:
            return g
    return None


def _vmem_limit_bytes(gen):
    """Explicit scoped-VMEM budget (defaults of 16/32 MiB get cramped for deep
    blocks with resident weights)."""
    if gen in ("v5", "v6"):
        return 96 * 1024 * 1024                 # 128 MiB physical — headroom left
    if gen == "v7":
        return 48 * 1024 * 1024                 # 64 MiB physical per TensorCore
    return None                                 # unknown chip: compiler default


def _choose_tile_p(P, gen):
    """Lane (pixel) tile: multiple of 128 for unmasked stores, as large as
    sensible for the HBM roofline; on v7x prefer >=2 tiles for the 2 TCs."""
    p128 = ((P + 127) // 128) * 128
    preferred = 1024 if gen == "v5" else 512    # v5e: 1 TC, amortize per-step cost
    if gen != "v7":
        return min(preferred, p128)
    if p128 >= 2 * preferred:
        return preferred
    half = (((P + 1) // 2 + 127) // 128) * 128
    return max(128, min(half, p128))


# ----------------------------------------------------------------------------
# Fused kernel
# ----------------------------------------------------------------------------
def _make_fused_kernel(num_layers, input_dim, growth_rate, c_mid, has_scale):
    """Kernel over one pixel tile.  refs = (x, *(vec, w1, w2)*L, out).

    The output VMEM block doubles as the channel-concat slab: rows = channels,
    lanes = pixels.  Rows [0, input_dim) hold the incoming features; each layer
    appends growth_rate rows.  The full (c_out, tile_p) block is written back
    to HBM once (lane-dense store)."""

    def kernel(*refs):
        x_ref = refs[0]
        params = refs[1:1 + 3 * num_layers]
        o_ref = refs[1 + 3 * num_layers]

        o_ref[:input_dim, :] = x_ref[...]

        col = input_dim
        for i in range(num_layers):
            vec, w1, w2 = params[3 * i:3 * i + 3]
            c_in_i = col
            off = 0
            if has_scale[i]:
                s0 = vec[off:off + c_in_i, :]
                off += c_in_i
            b0 = vec[off:off + c_in_i, :]
            off += c_in_i
            bb1 = vec[off:off + c_mid, :]
            off += c_mid
            b2 = vec[off:off + growth_rate, :]

            feats = o_ref[:col, :]                               # (col, tile_p)
            # BN0 (folded) + ReLU.  When all BN0 gammas are positive the scale
            # is pre-folded into w1's columns, so this is add+max only.
            if has_scale[i]:
                pre = feats * s0 + b0
            else:
                pre = feats + b0
            h = jnp.maximum(pre, 0).astype(w1.dtype)
            # conv1 (1x1, BN1 pre-folded) + ReLU — bf16 operands, f32 accum.
            h = jnp.dot(w1[...], h, preferred_element_type=jnp.float32) + bb1
            h = jnp.maximum(h, 0.0).astype(w2.dtype)
            # conv2 (1x1) -> growth_rate new channels appended to the slab.
            y = jnp.dot(w2[...], h, preferred_element_type=jnp.float32) + b2
            o_ref[col:col + growth_rate, :] = y.astype(o_ref.dtype)
            col += growth_rate

    return kernel


def dense_block_pallas(x_cp, folded_layers, *, tile_p=None):
    """x_cp: (C_in, P).  Returns (C_out, P) in the folded compute dtype."""
    c_in0, P = x_cp.shape
    num_layers = len(folded_layers)
    w1_0, w2_0 = folded_layers[0][1], folded_layers[0][2]
    c_mid, input_dim = w1_0.shape
    growth_rate = w2_0.shape[0]
    assert input_dim == c_in0
    c_out = input_dim + num_layers * growth_rate
    compute_dtype = np.dtype(w1_0.dtype)          # bf16 (default) or f32

    gen = _tpu_generation()
    if tile_p is None:
        tile_p = _choose_tile_p(P, gen)
    n_tiles = pl.cdiv(P, tile_p)
    if gen == "v7" and n_tiles % 2:
        n_tiles += 1                              # even grid -> both TCs busy
    P_pad = n_tiles * tile_p
    if P_pad != P:
        # Padded lanes produce garbage through bias/matmul but are sliced off
        # below; there are no in-kernel lane reductions to pollute.
        x_cp = jnp.pad(x_cp, ((0, 0), (0, P_pad - P)))
    x_cp = x_cp.astype(compute_dtype)             # bf16 input DMA (half traffic)

    # NOTE(perf): params have constant index_maps so they are DMA'd once per
    # grid sweep and stay resident.
    # TODO(synk): pipeline_mode=pl.Buffered(1) on the param specs would also
    # halve their VMEM footprint for very deep blocks.
    # TODO(synk): real DenseNet configs (growth 32, input >= 64) keep every
    # slab slice sublane-aligned; the tiny demo channels (4) are not, which
    # costs masked sublane ops but stays correct.
    in_specs = [pl.BlockSpec((input_dim, tile_p), lambda i: (0, i))]
    flat_params, has_scale = [], []
    flops = 0
    bytes_accessed = (input_dim + c_out) * P_pad * compute_dtype.itemsize
    for li, (vec, w1, w2) in enumerate(folded_layers):
        c_in_i = w1.shape[1]
        assert c_in_i == input_dim + li * growth_rate
        base = c_in_i + c_mid + growth_rate
        assert vec.shape[0] in (base, base + c_in_i)
        has_scale.append(vec.shape[0] == base + c_in_i)
        for a in (vec, w1, w2):
            flat_params.append(a)
            in_specs.append(pl.BlockSpec(a.shape, lambda i: (0, 0)))
            bytes_accessed += a.size * np.dtype(a.dtype).itemsize
        flops += 2 * P_pad * c_mid * (c_in_i + growth_rate)

    out = pl.pallas_call(
        _make_fused_kernel(num_layers, input_dim, growth_rate, c_mid,
                           tuple(has_scale)),
        out_shape=jax.ShapeDtypeStruct((c_out, P_pad), compute_dtype),
        grid_spec=pltpu.PrefetchScalarGridSpec(
            num_scalar_prefetch=0,
            grid=(n_tiles,),
            in_specs=in_specs,
            out_specs=pl.BlockSpec((c_out, tile_p), lambda i: (0, i)),
        ),
        compiler_params=pltpu.CompilerParams(
            dimension_semantics=("parallel",),
            vmem_limit_bytes=_vmem_limit_bytes(gen),
        ),
        cost_estimate=pl.CostEstimate(
            flops=flops, transcendentals=0, bytes_accessed=bytes_accessed),
    )(x_cp, *flat_params)

    return out[:, :P] if P_pad != P else out


# ----------------------------------------------------------------------------
# Host-side wrapper, parameter folding, reference
# ----------------------------------------------------------------------------
@functools.partial(jax.jit, static_argnames=("tile_p",))
def dense_block_forward(x_nchw, folded_layers, tile_p=None):
    """x_nchw: (N, C, H, W) -> (N, C + num_layers*growth_rate, H, W).
    Output dtype follows the folded compute dtype (bf16 by default)."""
    N, C, H, W = x_nchw.shape
    x_cp = jnp.transpose(x_nchw, (1, 0, 2, 3)).reshape(C, N * H * W)
    out_cp = dense_block_pallas(x_cp, folded_layers, tile_p=tile_p)
    c_out = out_cp.shape[0]
    return jnp.transpose(out_cp.reshape(c_out, N, H, W), (1, 0, 2, 3))


def init_dense_block_params(key, num_layers, input_dim, bn_size, growth_rate):
    """Deterministic synthetic eval-mode params (torch-oriented shapes)."""
    layers = []
    c_mid = bn_size * growth_rate
    for i in range(num_layers):
        c_in = input_dim + i * growth_rate
        keys = jax.random.split(jax.random.fold_in(key, i), 12)
        layers.append(dict(
            g0=1.0 + 0.1 * jax.random.normal(keys[0], (c_in,), jnp.float32),
            be0=0.1 * jax.random.normal(keys[1], (c_in,), jnp.float32),
            m0=0.1 * jax.random.normal(keys[2], (c_in,), jnp.float32),
            v0=1.0 + 0.1 * jax.random.uniform(keys[3], (c_in,), jnp.float32),
            # conv1: torch weight (c_mid, c_in, 1, 1) -> (c_mid, c_in)
            w1=jax.random.normal(keys[4], (c_mid, c_in), jnp.float32)
               / jnp.sqrt(jnp.float32(c_in)),
            b1=0.1 * jax.random.normal(keys[5], (c_mid,), jnp.float32),
            g1=1.0 + 0.1 * jax.random.normal(keys[6], (c_mid,), jnp.float32),
            be1=0.1 * jax.random.normal(keys[7], (c_mid,), jnp.float32),
            m1=0.1 * jax.random.normal(keys[8], (c_mid,), jnp.float32),
            v1=1.0 + 0.1 * jax.random.uniform(keys[9], (c_mid,), jnp.float32),
            # conv2: torch weight (growth_rate, c_mid, 1, 1) -> (growth_rate, c_mid)
            w2=jax.random.normal(keys[10], (growth_rate, c_mid), jnp.float32)
               / jnp.sqrt(jnp.float32(c_mid)),
            b2=0.1 * jax.random.normal(keys[11], (growth_rate,), jnp.float32),
        ))
    return layers


def fold_params_for_kernel(raw_layers, eps=1e-5, compute_dtype=jnp.bfloat16,
                           bias_dtype=None):
    """Fold BN0 (scale into conv1 columns when all gammas > 0, else keep it)
    and BN1 into conv1 weight/bias (exact).  Pack the per-layer column vectors
    into one array per layer: [s0?; b0; bb1; b2]."""
    compute_dtype = np.dtype(compute_dtype)
    if bias_dtype is None:
        # Elementwise BN0+ReLU math runs in the bias dtype: bf16 on v6e/v7x
        # (native bf16 VPU), f32 elsewhere (v5e has no bf16 VALU) and for the
        # exact f32 validation mode.
        if compute_dtype == np.dtype(np.float32) or _tpu_generation() not in ("v6", "v7"):
            bias_dtype = np.float32
        else:
            bias_dtype = compute_dtype
    folded = []
    for p in raw_layers:
        s0 = p["g0"] / jnp.sqrt(p["v0"] + eps)
        b0 = p["be0"] - p["m0"] * s0
        s1 = p["g1"] / jnp.sqrt(p["v1"] + eps)
        w1f = p["w1"] * s1[:, None]                  # BN1 after conv1 == row scale
        bb1 = p["b1"] * s1 + (p["be1"] - p["m1"] * s1)
        if bool(jnp.all(s0 > 0)):
            # relu(s*x + b) == s*relu(x + b/s) for s > 0 -> fold s into w1 cols;
            # the in-kernel prologue becomes add+max only.
            w1f = w1f * s0[None, :]
            vec = jnp.concatenate([b0 / s0, bb1, p["b2"]])
        else:
            vec = jnp.concatenate([s0, b0, bb1, p["b2"]])
        folded.append((vec[:, None].astype(bias_dtype),
                       w1f.astype(compute_dtype),
                       p["w2"].astype(compute_dtype)))
    return folded


def _reference_forward(x_nchw, raw_layers, eps=1e-5):
    """Plain-JAX (pixel-major) reference of the PyTorch module, eval mode."""
    N, C, H, W = x_nchw.shape
    x = jnp.transpose(x_nchw, (0, 2, 3, 1)).reshape(N * H * W, C)
    feats = [x]
    for p in raw_layers:
        cat = jnp.concatenate(feats, axis=1)
        h = (cat - p["m0"]) / jnp.sqrt(p["v0"] + eps) * p["g0"] + p["be0"]
        h = jnp.maximum(h, 0.0)
        h = h @ p["w1"].T + p["b1"]
        h = (h - p["m1"]) / jnp.sqrt(p["v1"] + eps) * p["g1"] + p["be1"]
        h = jnp.maximum(h, 0.0)
        feats.append(h @ p["w2"].T + p["b2"])
    out = jnp.concatenate(feats, axis=1)
    return jnp.transpose(out.reshape(N, H, W, out.shape[1]), (0, 3, 1, 2))


# ----------------------------------------------------------------------------
if __name__ == "__main__":
    num_layers, input_dim, bn_size, growth_rate, drop_rate = 3, 4, 2, 4, 0.0
    N, H, W = 2, 16, 16

    key = jax.random.PRNGKey(0)
    kx, kp = jax.random.split(key)
    x = jax.random.normal(kx, (N, input_dim, H, W), jnp.float32)

    raw_params = init_dense_block_params(kp, num_layers, input_dim, bn_size,
                                         growth_rate)
    ref = _reference_forward(x, raw_params)
    expected_c = input_dim + num_layers * growth_rate

    # 1) Exactness: f32 compute path vs plain-JAX reference (tight tolerance).
    folded_f32 = fold_params_for_kernel(raw_params, compute_dtype=jnp.float32)
    out_f32 = jax.block_until_ready(dense_block_forward(x, folded_f32))
    assert out_f32.shape == (N, expected_c, H, W), out_f32.shape
    assert jnp.allclose(out_f32, ref, atol=5e-4, rtol=5e-4), \
        float(jnp.max(jnp.abs(out_f32 - ref)))

    # 2) Default fast path: bf16 MXU + bf16 slab storage (loose tolerance).
    folded_bf16 = fold_params_for_kernel(raw_params)
    out_bf16 = jax.block_until_ready(dense_block_forward(x, folded_bf16))
    assert out_bf16.shape == (N, expected_c, H, W), out_bf16.shape
    err = float(jnp.max(jnp.abs(out_bf16.astype(jnp.float32) - ref)))
    tol = 5e-2 * float(jnp.max(jnp.abs(ref))) + 5e-2
    assert err < tol, (err, tol)

    # 3) Padding / multi-tile path: odd spatial size, forced small lane tile.
    x2 = jax.random.normal(jax.random.fold_in(kx, 1), (N, input_dim, 9, 9),
                           jnp.float32)
    ref2 = _reference_forward(x2, raw_params)
    out2 = jax.block_until_ready(dense_block_forward(x2, folded_f32, tile_p=128))
    assert jnp.allclose(out2, ref2, atol=5e-4, rtol=5e-4), \
        float(jnp.max(jnp.abs(out2 - ref2)))

    print("KERNEL_OK")
</pallas_src>

<mosaic_0001>
module attributes {stable_mosaic.version = 11 : i64} {
  func.func @kernel(%arg0: i32, %arg1: memref<4x512xf32, #tpu.memory_space<vmem>>, %arg2: memref<16x1xf32, #tpu.memory_space<vmem>>, %arg3: memref<8x4xf32, #tpu.memory_space<vmem>>, %arg4: memref<4x8xf32, #tpu.memory_space<vmem>>, %arg5: memref<20x1xf32, #tpu.memory_space<vmem>>, %arg6: memref<8x8xf32, #tpu.memory_space<vmem>>, %arg7: memref<4x8xf32, #tpu.memory_space<vmem>>, %arg8: memref<24x1xf32, #tpu.memory_space<vmem>>, %arg9: memref<8x12xf32, #tpu.memory_space<vmem>>, %arg10: memref<4x8xf32, #tpu.memory_space<vmem>>, %arg11: memref<16x512xf32, #tpu.memory_space<vmem>>) attributes {dimension_semantics = [#tpu.dimension_semantics<parallel>], iteration_bounds = array<i64: 1>, scalar_prefetch = 0 : i64, scratch_operands = 0 : i64, tpu.core_type = #tpu.core_type<tc>, window_params = [{transform_indices = @transform_0, window_bounds = array<i64: 4, 512>}, {pipeline_mode = #tpu.pipeline_mode<synchronous>, transform_indices = @transform_1, window_bounds = array<i64: 16, 1>}, {pipeline_mode = #tpu.pipeline_mode<synchronous>, transform_indices = @transform_2, window_bounds = array<i64: 8, 4>}, {pipeline_mode = #tpu.pipeline_mode<synchronous>, transform_indices = @transform_3, window_bounds = array<i64: 4, 8>}, {pipeline_mode = #tpu.pipeline_mode<synchronous>, transform_indices = @transform_4, window_bounds = array<i64: 20, 1>}, {pipeline_mode = #tpu.pipeline_mode<synchronous>, transform_indices = @transform_5, window_bounds = array<i64: 8, 8>}, {pipeline_mode = #tpu.pipeline_mode<synchronous>, transform_indices = @transform_6, window_bounds = array<i64: 4, 8>}, {pipeline_mode = #tpu.pipeline_mode<synchronous>, transform_indices = @transform_7, window_bounds = array<i64: 24, 1>}, {pipeline_mode = #tpu.pipeline_mode<synchronous>, transform_indices = @transform_8, window_bounds = array<i64: 8, 12>}, {pipeline_mode = #tpu.pipeline_mode<synchronous>, transform_indices = @transform_9, window_bounds = array<i64: 4, 8>}, {transform_indices = @transform_10, window_bounds = array<i64: 16, 512>}]} {
    %c0 = arith.constant 0 : index
    %c0_0 = arith.constant 0 : index
    %0 = vector.load %arg1[%c0, %c0_0] : memref<4x512xf32, #tpu.memory_space<vmem>>, vector<4x512xf32>
    %c0_1 = arith.constant 0 : index
    %c0_2 = arith.constant 0 : index
    %1 = vector.load %arg11[%c0_1, %c0_2] : memref<16x512xf32, #tpu.memory_space<vmem>>, vector<4x512xf32>
    tpu.vector_store %arg11[%c0_1, %c0_2], %0 {strides = array<i32>} : memref<16x512xf32, #tpu.memory_space<vmem>>, vector<4x512xf32>,
    %c0_3 = arith.constant 0 : index
    %c0_4 = arith.constant 0 : index
    %2 = vector.load %arg2[%c0_3, %c0_4] : memref<16x1xf32, #tpu.memory_space<vmem>>, vector<4x1xf32>
    %c4 = arith.constant 4 : index
    %c0_5 = arith.constant 0 : index
    %3 = vector.load %arg2[%c4, %c0_5] : memref<16x1xf32, #tpu.memory_space<vmem>>, vector<8x1xf32>
    %c12 = arith.constant 12 : index
    %c0_6 = arith.constant 0 : index
    %4 = vector.load %arg2[%c12, %c0_6] : memref<16x1xf32, #tpu.memory_space<vmem>>, vector<4x1xf32>
    %c0_7 = arith.constant 0 : index
    %c0_8 = arith.constant 0 : index
    %5 = vector.load %arg11[%c0_7, %c0_8] : memref<16x512xf32, #tpu.memory_space<vmem>>, vector<4x512xf32>
    %6 = vector.broadcast %2 : vector<4x1xf32> to vector<4x512xf32>
    %7 = arith.addf %5, %6 : vector<4x512xf32>
    %cst = arith.constant 0.000000e+00 : f32
    %8 = vector.broadcast %cst : f32 to vector<4x512xf32>
    %9 = arith.maximumf %7, %8 : vector<4x512xf32>
    %c0_9 = arith.constant 0 : index
    %c0_10 = arith.constant 0 : index
    %10 = vector.load %arg3[%c0_9, %c0_10] : memref<8x4xf32, #tpu.memory_space<vmem>>, vector<8x4xf32>
    %cst_11 = arith.constant dense<0.000000e+00> : vector<8x512xf32>
    %11 = tpu.matmul %10, %9, %cst_11 {dimension_numbers = #tpu.dot_dimension_numbers<[1], [0], [0], [1], [0, 0, 1, 1], [], []>} : vector<8x4xf32>, vector<4x512xf32>, vector<8x512xf32> -> vector<8x512xf32>
    %12 = vector.broadcast %3 : vector<8x1xf32> to vector<8x512xf32>
    %13 = arith.addf %11, %12 : vector<8x512xf32>
    %cst_12 = arith.constant 0.000000e+00 : f32
    %14 = vector.broadcast %cst_12 : f32 to vector<8x512xf32>
    %15 = arith.maximumf %13, %14 : vector<8x512xf32>
    %c0_13 = arith.constant 0 : index
    %c0_14 = arith.constant 0 : index
    %16 = vector.load %arg4[%c0_13, %c0_14] : memref<4x8xf32, #tpu.memory_space<vmem>>, vector<4x8xf32>
    %cst_15 = arith.constant dense<0.000000e+00> : vector<4x512xf32>
    %17 = tpu.matmul %16, %15, %cst_15 {dimension_numbers = #tpu.dot_dimension_numbers<[1], [0], [0], [1], [0, 0, 1, 1], [], []>} : vector<4x8xf32>, vector<8x512xf32>, vector<4x512xf32> -> vector<4x512xf32>
    %18 = vector.broadcast %4 : vector<4x1xf32> to vector<4x512xf32>
    %19 = arith.addf %17, %18 : vector<4x512xf32>
    %c4_16 = arith.constant 4 : index
    %c0_17 = arith.constant 0 : index
    %20 = vector.load %arg11[%c4_16, %c0_17] : memref<16x512xf32, #tpu.memory_space<vmem>>, vector<4x512xf32>
    tpu.vector_store %arg11[%c4_16, %c0_17], %19 {strides = array<i32>} : memref<16x512xf32, #tpu.memory_space<vmem>>, vector<4x512xf32>,
    %c0_18 = arith.constant 0 : index
    %c0_19 = arith.constant 0 : index
    %21 = vector.load %arg5[%c0_18, %c0_19] : memref<20x1xf32, #tpu.memory_space<vmem>>, vector<8x1xf32>
    %c8 = arith.constant 8 : index
    %c0_20 = arith.constant 0 : index
    %22 = vector.load %arg5[%c8, %c0_20] : memref<20x1xf32, #tpu.memory_space<vmem>>, vector<8x1xf32>
    %c16 = arith.constant 16 : index
    %c0_21 = arith.constant 0 : index
    %23 = vector.load %arg5[%c16, %c0_21] : memref<20x1xf32, #tpu.memory_space<vmem>>, vector<4x1xf32>
    %c0_22 = arith.constant 0 : index
    %c0_23 = arith.constant 0 : index
    %24 = vector.load %arg11[%c0_22, %c0_23] : memref<16x512xf32, #tpu.memory_space<vmem>>, vector<8x512xf32>
    %25 = vector.broadcast %21 : vector<8x1xf32> to vector<8x512xf32>
    %26 = arith.addf %24, %25 : vector<8x512xf32>
    %cst_24 = arith.constant 0.000000e+00 : f32
    %27 = vector.broadcast %cst_24 : f32 to vector<8x512xf32>
    %28 = arith.maximumf %26, %27 : vector<8x512xf32>
    %c0_25 = arith.constant 0 : index
    %c0_26 = arith.constant 0 : index
    %29 = vector.load %arg6[%c0_25, %c0_26] : memref<8x8xf32, #tpu.memory_space<vmem>>, vector<8x8xf32>
    %cst_27 = arith.constant dense<0.000000e+00> : vector<8x512xf32>
    %30 = tpu.matmul %29, %28, %cst_27 {dimension_numbers = #tpu.dot_dimension_numbers<[1], [0], [0], [1], [0, 0, 1, 1], [], []>} : vector<8x8xf32>, vector<8x512xf32>, vector<8x512xf32> -> vector<8x512xf32>
    %31 = vector.broadcast %22 : vector<8x1xf32> to vector<8x512xf32>
    %32 = arith.addf %30, %31 : vector<8x512xf32>
    %cst_28 = arith.constant 0.000000e+00 : f32
    %33 = vector.broadcast %cst_28 : f32 to vector<8x512xf32>
    %34 = arith.maximumf %32, %33 : vector<8x512xf32>
    %c0_29 = arith.constant 0 : index
    %c0_30 = arith.constant 0 : index
    %35 = vector.load %arg7[%c0_29, %c0_30] : memref<4x8xf32, #tpu.memory_space<vmem>>, vector<4x8xf32>
    %cst_31 = arith.constant dense<0.000000e+00> : vector<4x512xf32>
    %36 = tpu.matmul %35, %34, %cst_31 {dimension_numbers = #tpu.dot_dimension_numbers<[1], [0], [0], [1], [0, 0, 1, 1], [], []>} : vector<4x8xf32>, vector<8x512xf32>, vector<4x512xf32> -> vector<4x512xf32>
    %37 = vector.broadcast %23 : vector<4x1xf32> to vector<4x512xf32>
    %38 = arith.addf %36, %37 : vector<4x512xf32>
    %c8_32 = arith.constant 8 : index
    %c0_33 = arith.constant 0 : index
    %39 = vector.load %arg11[%c8_32, %c0_33] : memref<16x512xf32, #tpu.memory_space<vmem>>, vector<4x512xf32>
    tpu.vector_store %arg11[%c8_32, %c0_33], %38 {strides = array<i32>} : memref<16x512xf32, #tpu.memory_space<vmem>>, vector<4x512xf32>,
    %c0_34 = arith.constant 0 : index
    %c0_35 = arith.constant 0 : index
    %40 = vector.load %arg8[%c0_34, %c0_35] : memref<24x1xf32, #tpu.memory_space<vmem>>, vector<12x1xf32>
    %c12_36 = arith.constant 12 : index
    %c0_37 = arith.constant 0 : index
    %41 = vector.load %arg8[%c12_36, %c0_37] : memref<24x1xf32, #tpu.memory_space<vmem>>, vector<8x1xf32>
    %c20 = arith.constant 20 : index
    %c0_38 = arith.constant 0 : index
    %42 = vector.load %arg8[%c20, %c0_38] : memref<24x1xf32, #tpu.memory_space<vmem>>, vector<4x1xf32>
    %c0_39 = arith.constant 0 : index
    %c0_40 = arith.constant 0 : index
    %43 = vector.load %arg11[%c0_39, %c0_40] : memref<16x512xf32, #tpu.memory_space<vmem>>, vector<12x512xf32>
    %44 = vector.broadcast %40 : vector<12x1xf32> to vector<12x512xf32>
    %45 = arith.addf %43, %44 : vector<12x512xf32>
    %cst_41 = arith.constant 0.000000e+00 : f32
    %46 = vector.broadcast %cst_41 : f32 to vector<12x512xf32>
    %47 = arith.maximumf %45, %46 : vector<12x512xf32>
    %c0_42 = arith.constant 0 : index
    %c0_43 = arith.constant 0 : index
    %48 = vector.load %arg9[%c0_42, %c0_43] : memref<8x12xf32, #tpu.memory_space<vmem>>, vector<8x12xf32>
    %cst_44 = arith.constant dense<0.000000e+00> : vector<8x512xf32>
    %49 = tpu.matmul %48, %47, %cst_44 {dimension_numbers = #tpu.dot_dimension_numbers<[1], [0], [0], [1], [0, 0, 1, 1], [], []>} : vector<8x12xf32>, vector<12x512xf32>, vector<8x512xf32> -> vector<8x512xf32>
    %50 = vector.broadcast %41 : vector<8x1xf32> to vector<8x512xf32>
    %51 = arith.addf %49, %50 : vector<8x512xf32>
    %cst_45 = arith.constant 0.000000e+00 : f32
    %52 = vector.broadcast %cst_45 : f32 to vector<8x512xf32>
    %53 = arith.maximumf %51, %52 : vector<8x512xf32>
    %c0_46 = arith.constant 0 : index
    %c0_47 = arith.constant 0 : index
    %54 = vector.load %arg10[%c0_46, %c0_47] : memref<4x8xf32, #tpu.memory_space<vmem>>, vector<4x8xf32>
    %cst_48 = arith.constant dense<0.000000e+00> : vector<4x512xf32>
    %55 = tpu.matmul %54, %53, %cst_48 {dimension_numbers = #tpu.dot_dimension_numbers<[1], [0], [0], [1], [0, 0, 1, 1], [], []>} : vector<4x8xf32>, vector<8x512xf32>, vector<4x512xf32> -> vector<4x512xf32>
    %56 = vector.broadcast %42 : vector<4x1xf32> to vector<4x512xf32>
    %57 = arith.addf %55, %56 : vector<4x512xf32>
    %c12_49 = arith.constant 12 : index
    %c0_50 = arith.constant 0 : index
    %58 = vector.load %arg11[%c12_49, %c0_50] : memref<16x512xf32, #tpu.memory_space<vmem>>, vector<4x512xf32>
    tpu.vector_store %arg11[%c12_49, %c0_50], %57 {strides = array<i32>} : memref<16x512xf32, #tpu.memory_space<vmem>>, vector<4x512xf32>,
    return
  }
  func.func @transform_0(%arg0: i32) -> (i32, i32) {
    %c0_i32 = arith.constant 0 : i32
    %c0_i32_0 = arith.constant 0 : i32
    return %c0_i32, %arg0 : i32, i32
  }
  func.func @transform_1(%arg0: i32) -> (i32, i32) {
    %c0_i32 = arith.constant 0 : i32
    %c0_i32_0 = arith.constant 0 : i32
    %c0_i32_1 = arith.constant 0 : i32
    return %c0_i32, %c0_i32_0 : i32, i32
  }
  func.func @transform_2(%arg0: i32) -> (i32, i32) {
    %c0_i32 = arith.constant 0 : i32
    %c0_i32_0 = arith.constant 0 : i32
    %c0_i32_1 = arith.constant 0 : i32
    return %c0_i32, %c0_i32_0 : i32, i32
  }
  func.func @transform_3(%arg0: i32) -> (i32, i32) {
    %c0_i32 = arith.constant 0 : i32
    %c0_i32_0 = arith.constant 0 : i32
    %c0_i32_1 = arith.constant 0 : i32
    return %c0_i32, %c0_i32_0 : i32, i32
  }
  func.func @transform_4(%arg0: i32) -> (i32, i32) {
    %c0_i32 = arith.constant 0 : i32
    %c0_i32_0 = arith.constant 0 : i32
    %c0_i32_1 = arith.constant 0 : i32
    return %c0_i32, %c0_i32_0 : i32, i32
  }
  func.func @transform_5(%arg0: i32) -> (i32, i32) {
    %c0_i32 = arith.constant 0 : i32
    %c0_i32_0 = arith.constant 0 : i32
    %c0_i32_1 = arith.constant 0 : i32
    return %c0_i32, %c0_i32_0 : i32, i32
  }
  func.func @transform_6(%arg0: i32) -> (i32, i32) {
    %c0_i32 = arith.constant 0 : i32
    %c0_i32_0 = arith.constant 0 : i32
    %c0_i32_1 = arith.constant 0 : i32
    return %c0_i32, %c0_i32_0 : i32, i32
  }
  func.func @transform_7(%arg0: i32) -> (i32, i32) {
    %c0_i32 = arith.constant 0 : i32
    %c0_i32_0 = arith.constant 0 : i32
    %c0_i32_1 = arith.constant 0 : i32
    return %c0_i32, %c0_i32_0 : i32, i32
  }
  func.func @transform_8(%arg0: i32) -> (i32, i32) {
    %c0_i32 = arith.constant 0 : i32
    %c0_i32_0 = arith.constant 0 : i32
    %c0_i32_1 = arith.constant 0 : i32
    return %c0_i32, %c0_i32_0 : i32, i32
  }
  func.func @transform_9(%arg0: i32) -> (i32, i32) {
    %c0_i32 = arith.constant 0 : i32
    %c0_i32_0 = arith.constant 0 : i32
    %c0_i32_1 = arith.constant 0 : i32
    return %c0_i32, %c0_i32_0 : i32, i32
  }
  func.func @transform_10(%arg0: i32) -> (i32, i32) {
    %c0_i32 = arith.constant 0 : i32
    %c0_i32_0 = arith.constant 0 : i32
    return %c0_i32, %arg0 : i32, i32
  }
}

</mosaic_0001>

<bundles_post_ra>
// kernel: dense_block_forward.1
= control target key start
LH: loop header
LB: loop body
LE: loop exit
PB: predicated region body
PF: predicated region fallthrough
CT: control target
= control target key end

     0   :  { %v1137_v0 = vmov 0   ;;  %v1138_v6 = vmov 0.0   ;;  %vm77_vm0 = vcmask 1043456   ;;  %vm73_vm1 = vcmask 31744   ;;  %s1376_s1 = inlined_call_operand.vmem [shape: f32[16,1], index: 1, kind: input, shape index: {}]   ;;  %s1377_s0 = inlined_call_operand.vmem [shape: f32[4,512], index: 0, kind: input, shape index: {}]   ;;  %s1378_s10 = inlined_call_operand.vmem [shape: f32[16,512], index: 10, kind: output, shape index: {}]   ;;  %s1379_s4 = inlined_call_operand.vmem [shape: f32[20,1], index: 4, kind: input, shape index: {}]   ;;  %s1380_s7 = inlined_call_operand.vmem [shape: f32[24,1], index: 7, kind: input, shape index: {}]   ;;  %s1381_s2 = inlined_call_operand.vmem [shape: f32[8,4], index: 2, kind: input, shape index: {}]   ;;  %s1382_s3 = inlined_call_operand.vmem [shape: f32[4,8], index: 3, kind: input, shape index: {}]   ;;  %s1383_s5 = inlined_call_operand.vmem [shape: f32[8,8], index: 5, kind: input, shape index: {}]   ;;  %s1384_s6 = inlined_call_operand.vmem [shape: f32[4,8], index: 6, kind: input, shape index: {}]   ;;  %s1385_s8 = inlined_call_operand.vmem [shape: f32[8,12], index: 8, kind: input, shape index: {}]   ;;  %s1386_s9 = inlined_call_operand.vmem [shape: f32[4,8], index: 9, kind: input, shape index: {}]  }
   0x1   :  { %1133 = vset.pattern.permute.xlu0 %v1137_v0  ;;  %v47_v1 = vld [vmem:[%s1376_s1] sm:$0xf]  ;;  %1134 = vset.pattern.permute.xlu1 %v1137_v0  ;;  %v48_v3 = vld [vmem:[%s1376_s1 + $0x4] sm:$0xff]  ;;  %v736_v10 = vld [vmem:[%s1380_s7 + $0xc] sm:$0xff]  ;;  %vm242_vm2 = vcmask 64512   ;;  %vm778_vm3 = vcmask 97280  }
   0x2   :  { %56 = vperm.xlu0 %1133, %v47_v1   ;;  %v35_v2 = vld [vmem:[%s1377_s0] sm:$0xff]  ;;  %v36_v5 = vld [vmem:[%s1377_s0 + $0x8] sm:$0xff]  ;;  %154 = vmatprep.mubr.f32.mxu0 %v1138_v6  ;;  %v406_v27 = vld [vmem:[%s1379_s4 + $0x10] sm:$0xf] }
   0x3   :  { %v39_v4 = vcombine.high %v35_v2, %v35_v2  ;;  %43 = vst [vmem:[%s1378_s10] sm:$0xf] %v35_v2  ;;  %225 = vmatprep.mubr.f32.mxu1 %v1138_v6  ;;  %v40_v7 = vcombine.high %v36_v5, %v36_v5  ;;  %45 = vst [vmem:[%s1378_s10 + $0x10] sm:$0xf] %v36_v5  ;;  %v405_v8 = vld [vmem:[%s1379_s4 + $0x8] sm:$0xff]  ;;  %v67_v24 = vld [vmem:[%s1381_s2] sm:$0xff] }
   0x4   :  { %v735_v9 = vld [vmem:[%s1380_s7 + $0x8] sm:$0xf]  ;;  %v49_v25 = vld [vmem:[%s1376_s1 + $0xc] sm:$0xf]  ;;  %v404_v26 = vld [vmem:[%s1379_s4] sm:$0xff] }
   0x5   :  { %44 = vst [vmem:[%s1378_s10 + $0x8] sm:$0xf] %v39_v4  ;;  %46 = vst [vmem:[%s1378_s10 + $0x18] sm:$0xf] %v40_v7  ;;  %239 = vperm.xlu1 %1134, %v49_v25   ;;  %v734_v28 = vld [vmem:[%s1380_s7] sm:$0xff] }
   0x6   :  { %70 = vperm.xlu0 %1133, %v48_v3   ;;  %v737_v29 = vld [vmem:[%s1380_s7 + $0x14] sm:$0xf]  ;;  %v236_v43 = vld [vmem:[%s1382_s3] sm:$0xf] }
   0x7   :  { %v424_v7 = vld [vmem:[%s1383_s5] sm:$0xff] }
   0x9   :  { %413 = vperm.xlu1 %1134, %v404_v26  }
   0xa   :  { %427 = vperm.xlu0 %1133, %v405_v8   ;;  %v50_v11 = vld [vmem:[%s1378_s10] sm:$0xf]  ;;  %v52_v14 = vld [vmem:[%s1378_s10 + $0x10] sm:$0xf] }
   0xc   :  { %v51_v12 = vld [vmem:[%s1378_s10 + $0x8] sm:$0xf]  ;;  %v53_v13 = vld [vmem:[%s1378_s10 + $0x18] sm:$0xf] }
   0xd   :  { %582 = vperm.xlu1 %1134, %v406_v27  }
   0xe   :  { %753 = vperm.xlu0 %1133, %v735_v9  }
  0x11   :  { %748 = vperm.xlu1 %1134, %v734_v28  }
  0x12   :  { %775 = vperm.xlu0 %1133, %v736_v10  }
  0x15   :  { %943 = vperm.xlu1 %1134, %v737_v29  }
  0x7d   :  { %v57_v15 = vpop.permute.xlu0 %56 }
  0x7e   :  { %v60_v16 = vadd.f32 %v57_v15, %v51_v12  ;;  %v62_v17 = vadd.f32 %v57_v15, %v53_v13  ;;  %v59_v18 = vadd.f32 %v57_v15, %v50_v11  ;;  %v61_v19 = vadd.f32 %v57_v15, %v52_v14 }
  0x80   :  { %v64_v20 = vmax.f32 %v60_v16, 0.0  ;;  %v66_v21 = vmax.f32 %v62_v17, 0.0  ;;  %v63_v22 = vmax.f32 %v59_v18, 0.0  ;;  %v65_v23 = vmax.f32 %v61_v19, 0.0  ;;  %v240_v44 = vpop.permute.xlu1 %239 }
  0x81   :  { %v71_v32 = vpop.permute.xlu0 %70 }
  0x82   :  { %1111 = vmatprep.subr.msk.mxu0 %vm77_vm0, %v64_v20  ;;  %1114 = vmatprep.subr.msk.mxu1 %vm77_vm0, %v66_v21  ;;  %v579_v21 = vld [vmem:[%s1384_s6] sm:$0xf] }
  0x83   :  { %1112 = vmatpush1.msk.msra.mxu0 %vm77_vm0, %v63_v22  ;;  %1115 = vmatpush1.msk.msra.mxu1 %vm77_vm0, %v65_v23 }
  0x84   :  { %1113 = vmatmul.mubr.msk.f32.vlgmr.msra.gmra.mxu0 %vm73_vm1, %v67_v24  ;;  %1116 = vmatmul.mubr.msk.f32.vlgmr.msra.gmra.mxu1 %vm73_vm1, %v67_v24  ;;  %v414_v59 = vpop.permute.xlu1 %413 }
  0x85   :  { %310 = vmatprep.mubr.f32.mxu0 %v1138_v6  ;;  %381 = vmatprep.mubr.f32.mxu1 %v1138_v6  ;;  %v428_v10 = vpop.permute.xlu0 %427 }
  0x88   :  { %v583_v22 = vpop.permute.xlu1 %582 }
 0x144   :  { %v156_v30 = vpop.f32.mrf.mxu0  ;;  %v227_v31 = vpop.f32.mrf.mxu1 }
 0x145   :  { %v157_v33 = vadd.f32 %v156_v30, %v71_v32  ;;  %v228_v34 = vadd.f32 %v227_v31, %v71_v32 }
 0x146   :  { %v158_v35 = vpop.f32.mrf.mxu0  ;;  %v229_v36 = vpop.f32.mrf.mxu1 }
 0x147   :  { %v159_v37 = vadd.f32 %v158_v35, %v71_v32  ;;  %v230_v38 = vadd.f32 %v229_v36, %v71_v32  ;;  %v232_v41 = vmax.f32 %v157_v33, 0.0  ;;  %v234_v42 = vmax.f32 %v228_v34, 0.0  ;;  %v754_v33 = vpop.permute.xlu0 %753  ;;  %v749_v34 = vpop.permute.xlu1 %748 }
 0x149   :  { %v233_v39 = vmax.f32 %v159_v37, 0.0  ;;  %v235_v40 = vmax.f32 %v230_v38, 0.0 }
 0x14b   :  { %276 = vmatprep.subr.mxu0 %v233_v39  ;;  %347 = vmatprep.subr.mxu1 %v235_v40 }
 0x14c   :  { %277 = vmatpush1.msra.mxu0 %v232_v41  ;;  %348 = vmatpush1.msra.mxu1 %v234_v42 }
 0x14d   :  { %1117 = vmatmul.mubr.msk.f32.vlgmr.msra.gmra.mxu0 %vm242_vm2, %v236_v43  ;;  %1118 = vmatmul.mubr.msk.f32.vlgmr.msra.gmra.mxu1 %vm242_vm2, %v236_v43 }
 0x14e   :  { %497 = vmatprep.mubr.f32.mxu0 %v1138_v6  ;;  %568 = vmatprep.mubr.f32.mxu1 %v1138_v6 }
 0x20d   :  { %v312_v45 = vpop.f32.mrf.mxu0  ;;  %v383_v46 = vpop.f32.mrf.mxu1 }
 0x20e   :  { %v313_v47 = vadd.f32 %v312_v45, %v240_v44  ;;  %v384_v48 = vadd.f32 %v383_v46, %v240_v44 }
 0x20f   :  { %v314_v49 = vpop.f32.mrf.mxu0  ;;  %v385_v50 = vpop.f32.mrf.mxu1 }
 0x210   :  { %v392_v51 = vrot.slane %v313_v47, 4  ;;  %v394_v52 = vrot.slane %v384_v48, 4  ;;  %v315_v53 = vadd.f32 %v314_v49, %v240_v44  ;;  %v386_v54 = vadd.f32 %v385_v50, %v240_v44 }
 0x212   :  { %400 = vst [vmem:[%s1378_s10] sm:$0xf0] %v392_v51  ;;  %402 = vst [vmem:[%s1378_s10 + $0x10] sm:$0xf0] %v394_v52  ;;  %v393_v55 = vrot.slane %v315_v53, 4  ;;  %v395_v56 = vrot.slane %v386_v54, 4  ;;  %v772_v53 = vld [vmem:[%s1385_s8] sm:$0xff] }
 0x214   :  { %401 = vst [vmem:[%s1378_s10 + $0x8] sm:$0xf0] %v393_v55  ;;  %403 = vst [vmem:[%s1378_s10 + $0x18] sm:$0xf0] %v395_v56  ;;  %v776_v56 = vpop.permute.xlu0 %775 }
 0x219   :  { %v1287_v57 = vld [vmem:[%s1378_s10] sm:$0xff]  ;;  %v1292_v58 = vld [vmem:[%s1378_s10 + $0x10] sm:$0xff] }
 0x21a   :  { %v416_v62 = vadd.f32 %v414_v59, %v1287_v57  ;;  %v418_v63 = vadd.f32 %v414_v59, %v1292_v58  ;;  %v756_v43 = vadd.f32 %v749_v34, %v1287_v57  ;;  %v758_v44 = vadd.f32 %v749_v34, %v1292_v58 }
 0x21b   :  { %v1297_v60 = vld [vmem:[%s1378_s10 + $0x8] sm:$0xff]  ;;  %v1302_v61 = vld [vmem:[%s1378_s10 + $0x18] sm:$0xff] }
 0x21c   :  { %v417_v0 = vadd.f32 %v414_v59, %v1297_v60  ;;  %v419_v1 = vadd.f32 %v414_v59, %v1302_v61  ;;  %v420_v4 = vmax.f32 %v416_v62, 0.0  ;;  %v422_v5 = vmax.f32 %v418_v63, 0.0 }
 0x21d   :  { %v757_v41 = vadd.f32 %v749_v34, %v1297_v60  ;;  %v759_v42 = vadd.f32 %v749_v34, %v1302_v61  ;;  %v764_v51 = vmax.f32 %v756_v43, 0.0  ;;  %v766_v52 = vmax.f32 %v758_v44, 0.0 }
 0x21e   :  { %v421_v2 = vmax.f32 %v417_v0, 0.0  ;;  %v423_v3 = vmax.f32 %v419_v1, 0.0 }
 0x21f   :  { %v765_v49 = vmax.f32 %v757_v41, 0.0  ;;  %v767_v50 = vmax.f32 %v759_v42, 0.0 }
 0x220   :  { %463 = vmatprep.subr.mxu0 %v421_v2  ;;  %534 = vmatprep.subr.mxu1 %v423_v3  ;;  %v940_v3 = vld [vmem:[%s1386_s9] sm:$0xf] }
 0x221   :  { %464 = vmatpush1.msra.mxu0 %v420_v4  ;;  %535 = vmatpush1.msra.mxu1 %v422_v5 }
 0x222   :  { %1119 = vmatmul.mubr.msk.f32.vlgmr.msra.gmra.mxu0 %vm242_vm2, %v424_v7  ;;  %1120 = vmatmul.mubr.msk.f32.vlgmr.msra.gmra.mxu1 %vm242_vm2, %v424_v7 }
 0x223   :  { %652 = vmatprep.mubr.f32.mxu0 %v1138_v6  ;;  %723 = vmatprep.mubr.f32.mxu1 %v1138_v6 }
 0x2e2   :  { %v499_v8 = vpop.f32.mrf.mxu0  ;;  %v570_v9 = vpop.f32.mrf.mxu1 }
 0x2e3   :  { %v500_v11 = vadd.f32 %v499_v8, %v428_v10  ;;  %v571_v12 = vadd.f32 %v570_v9, %v428_v10 }
 0x2e4   :  { %v501_v13 = vpop.f32.mrf.mxu0  ;;  %v572_v14 = vpop.f32.mrf.mxu1 }
 0x2e5   :  { %v502_v15 = vadd.f32 %v501_v13, %v428_v10  ;;  %v573_v16 = vadd.f32 %v572_v14, %v428_v10  ;;  %v575_v19 = vmax.f32 %v500_v11, 0.0  ;;  %v577_v20 = vmax.f32 %v571_v12, 0.0 }
 0x2e7   :  { %v576_v17 = vmax.f32 %v502_v15, 0.0  ;;  %v578_v18 = vmax.f32 %v573_v16, 0.0 }
 0x2e9   :  { %618 = vmatprep.subr.mxu0 %v576_v17  ;;  %689 = vmatprep.subr.mxu1 %v578_v18 }
 0x2ea   :  { %619 = vmatpush1.msra.mxu0 %v575_v19  ;;  %690 = vmatpush1.msra.mxu1 %v577_v20 }
 0x2eb   :  { %1121 = vmatmul.mubr.msk.f32.vlgmr.msra.gmra.mxu0 %vm242_vm2, %v579_v21  ;;  %1122 = vmatmul.mubr.msk.f32.vlgmr.msra.gmra.mxu1 %vm242_vm2, %v579_v21 }
 0x2ec   :  { %858 = vmatprep.mubr.f32.mxu0 %v1138_v6  ;;  %929 = vmatprep.mubr.f32.mxu1 %v1138_v6 }
 0x3ab   :  { %v654_v23 = vpop.f32.mrf.mxu0  ;;  %v725_v24 = vpop.f32.mrf.mxu1 }
 0x3ac   :  { %v655_v25 = vadd.f32 %v654_v23, %v583_v22  ;;  %v726_v26 = vadd.f32 %v725_v24, %v583_v22 }
 0x3ad   :  { %v656_v27 = vpop.f32.mrf.mxu0  ;;  %v727_v28 = vpop.f32.mrf.mxu1 }
 0x3ae   :  { %730 = vst [vmem:[%s1378_s10 + $0x20] sm:$0xf] %v655_v25  ;;  %732 = vst [vmem:[%s1378_s10 + $0x30] sm:$0xf] %v726_v26  ;;  %v657_v29 = vadd.f32 %v656_v27, %v583_v22  ;;  %v728_v30 = vadd.f32 %v727_v28, %v583_v22 }
 0x3b0   :  { %731 = vst [vmem:[%s1378_s10 + $0x28] sm:$0xf] %v657_v29  ;;  %733 = vst [vmem:[%s1378_s10 + $0x38] sm:$0xf] %v728_v30 }
 0x3b5   :  { %v742_v31 = vld [vmem:[%s1378_s10 + $0x20] sm:$0xf]  ;;  %v744_v32 = vld [vmem:[%s1378_s10 + $0x30] sm:$0xf] }
 0x3b6   :  { %v760_v37 = vadd.f32 %v754_v33, %v742_v31  ;;  %v762_v38 = vadd.f32 %v754_v33, %v744_v32 }
 0x3b7   :  { %v743_v35 = vld [vmem:[%s1378_s10 + $0x28] sm:$0xf]  ;;  %v745_v36 = vld [vmem:[%s1378_s10 + $0x38] sm:$0xf] }
 0x3b8   :  { %v761_v39 = vadd.f32 %v754_v33, %v743_v35  ;;  %v763_v40 = vadd.f32 %v754_v33, %v745_v36  ;;  %v768_v47 = vmax.f32 %v760_v37, 0.0  ;;  %v770_v48 = vmax.f32 %v762_v38, 0.0 }
 0x3ba   :  { %v769_v45 = vmax.f32 %v761_v39, 0.0  ;;  %v771_v46 = vmax.f32 %v763_v40, 0.0 }
 0x3bc   :  { %1123 = vmatprep.subr.msk.mxu0 %vm77_vm0, %v769_v45  ;;  %1126 = vmatprep.subr.msk.mxu1 %vm77_vm0, %v771_v46 }
 0x3bd   :  { %1124 = vmatpush1.msk.msra.mxu0 %vm77_vm0, %v768_v47  ;;  %1127 = vmatpush1.msk.msra.mxu1 %vm77_vm0, %v770_v48 }
 0x3be   :  { %824 = vmatprep.subr.mxu0 %v765_v49  ;;  %895 = vmatprep.subr.mxu1 %v767_v50 }
 0x3bf   :  { %825 = vmatpush1.msra.mxu0 %v764_v51  ;;  %896 = vmatpush1.msra.mxu1 %v766_v52 }
 0x3c0   :  { %1125 = vmatmul.mubr.msk.f32.vlgmr.msra.gmra.mxu0 %vm778_vm3, %v772_v53  ;;  %1128 = vmatmul.mubr.msk.f32.vlgmr.msra.gmra.mxu1 %vm778_vm3, %v772_v53 }
 0x3c1   :  { %1013 = vmatprep.mubr.f32.mxu0 %v1138_v6  ;;  %1084 = vmatprep.mubr.f32.mxu1 %v1138_v6  ;;  %v944_v6 = vpop.permute.xlu1 %943 }
 0x480   :  { %v860_v54 = vpop.f32.mrf.mxu0  ;;  %v931_v55 = vpop.f32.mrf.mxu1 }
 0x481   :  { %v861_v57 = vadd.f32 %v860_v54, %v776_v56  ;;  %v932_v58 = vadd.f32 %v931_v55, %v776_v56 }
 0x482   :  { %v862_v59 = vpop.f32.mrf.mxu0  ;;  %v933_v60 = vpop.f32.mrf.mxu1 }
 0x483   :  { %v863_v61 = vadd.f32 %v862_v59, %v776_v56  ;;  %v934_v62 = vadd.f32 %v933_v60, %v776_v56  ;;  %v936_v1 = vmax.f32 %v861_v57, 0.0  ;;  %v938_v2 = vmax.f32 %v932_v58, 0.0 }
 0x485   :  { %v937_v63 = vmax.f32 %v863_v61, 0.0  ;;  %v939_v0 = vmax.f32 %v934_v62, 0.0 }
 0x487   :  { %979 = vmatprep.subr.mxu0 %v937_v63  ;;  %1050 = vmatprep.subr.mxu1 %v939_v0 }
 0x488   :  { %980 = vmatpush1.msra.mxu0 %v936_v1  ;;  %1051 = vmatpush1.msra.mxu1 %v938_v2 }
 0x489   :  { %1129 = vmatmul.mubr.msk.f32.vlgmr.msra.gmra.mxu0 %vm242_vm2, %v940_v3  ;;  %1130 = vmatmul.mubr.msk.f32.vlgmr.msra.gmra.mxu1 %vm242_vm2, %v940_v3 }
 0x549   :  { %v1015_v4 = vpop.f32.mrf.mxu0  ;;  %v1086_v5 = vpop.f32.mrf.mxu1 }
 0x54a   :  { %v1016_v7 = vadd.f32 %v1015_v4, %v944_v6  ;;  %v1087_v8 = vadd.f32 %v1086_v5, %v944_v6 }
 0x54b   :  { %v1017_v9 = vpop.f32.mrf.mxu0  ;;  %v1088_v10 = vpop.f32.mrf.mxu1 }
 0x54c   :  { %v1095_v11 = vrot.slane %v1016_v7, 4  ;;  %v1097_v12 = vrot.slane %v1087_v8, 4  ;;  %v1018_v13 = vadd.f32 %v1017_v9, %v944_v6  ;;  %v1089_v14 = vadd.f32 %v1088_v10, %v944_v6 }
 0x54e   :  { %1103 = vst [vmem:[%s1378_s10 + $0x20] sm:$0xf0] %v1095_v11  ;;  %1105 = vst [vmem:[%s1378_s10 + $0x30] sm:$0xf0] %v1097_v12  ;;  %v1096_v15 = vrot.slane %v1018_v13, 4  ;;  %v1098_v16 = vrot.slane %v1089_v14, 4 }
 0x550   :  { %1104 = vst [vmem:[%s1378_s10 + $0x28] sm:$0xf0] %v1096_v15  ;;  %1106 = vst [vmem:[%s1378_s10 + $0x38] sm:$0xf0] %v1098_v16 }

</bundles_post_ra>
